<compile_context>
chip_gen: v7x
topology: tpu7x:2x2x1
jax: 0.10.0
libtpu: 0.0.40
codegen_flags: <defaults>
</compile_context>

<pallas_src>
import functools

import jax
import jax.numpy as jnp
from jax.experimental import pallas as pl
from jax.experimental.pallas import tpu as pltpu


def _rmsnorm_kernel(x_ref, w_ref, o_ref, *, eps: float):
    # x_ref: (tile_rows, hidden), w_ref: (1, hidden) already in o_ref.dtype.
    xf = x_ref[...].astype(jnp.float32)
    var = jnp.mean(xf * xf, axis=-1, keepdims=True)
    inv = jax.lax.rsqrt(var + eps)
    # Re-read + re-cast the VMEM tile instead of keeping `xf` live across both
    # uses: drops peak scratch by ~tile_rows*hidden*4 bytes (perf review).
    x_norm = x_ref[...].astype(jnp.float32) * inv
    # Cast the normalized activations back to the input dtype BEFORE applying
    # the weight (exactly as liger / HF LlamaRMSNorm do).
    o_ref[...] = w_ref[...] * x_norm.astype(o_ref.dtype)


def _sublane_multiple(dtype) -> int:
    # Sublane packing per 32-bit word: f32 -> 8, bf16 -> 16, int8/fp8 -> 32.
    return {4: 8, 2: 16, 1: 32}.get(jnp.dtype(dtype).itemsize, 8)


def _round_up(x: int, m: int) -> int:
    return ((x + m - 1) // m) * m


def _vmem_capacity_bytes() -> int:
    try:
        cap = int(pltpu.get_tpu_info().vmem_capacity_bytes)
        if cap > 0:
            return cap
    except Exception:
        pass
    return 64 << 20  # conservative default (v7x-sized)


def _per_row_footprint_bytes(hidden: int, itemsize: int) -> int:
    """Pipelined VMEM bytes needed per tile row.

    2 buffered input tiles + 2 buffered output tiles (activation dtype) plus
    ~2 whole-tile fp32 intermediates (upcast x and x_norm) in the kernel body.
    """
    io_bytes = hidden * itemsize
    f32_bytes = hidden * 4
    return 4 * io_bytes + 2 * f32_bytes


def _choose_tile_rows(rows: int, hidden: int, dtype,
                      *, max_tile_rows: int = 4096) -> int:
    """Largest sublane-aligned row tile whose full footprint fits the budget."""
    sub = _sublane_multiple(dtype)
    itemsize = jnp.dtype(dtype).itemsize
    cap = _vmem_capacity_bytes()
    if cap >= (96 << 20):
        # 128 MiB parts (v5e/v6e): go big so wide-hidden f32 keeps >=256 rows.
        budget = 88 << 20
    else:
        # 64 MiB parts (v7x): target ~40 MiB total, >= 8 MiB headroom.
        budget = min(40 << 20, cap - (8 << 20))
    per_row = _per_row_footprint_bytes(hidden, itemsize)
    fit = max(sub, budget // per_row)
    tile = min(max_tile_rows, int(fit))
    tile = max(sub, (tile // sub) * sub)
    # Never ask for (much) more than the array actually has.
    tile = min(tile, _round_up(rows, sub))
    return tile


def llama_rms_norm(hidden_states: jax.Array, weight: jax.Array,
                   eps: float = 1e-6, tile_rows: int | None = None) -> jax.Array:
    """Apply RMSNorm over the last dim of hidden_states with a Pallas kernel."""
    orig_shape = hidden_states.shape
    hidden = orig_shape[-1]
    x2d = hidden_states.reshape(-1, hidden)
    rows = x2d.shape[0]
    itemsize = jnp.dtype(hidden_states.dtype).itemsize

    if tile_rows is None:
        tile_rows = _choose_tile_rows(rows, hidden, hidden_states.dtype)
    else:
        sub = _sublane_multiple(hidden_states.dtype)
        tile_rows = max(sub, _round_up(int(tile_rows), sub))

    # Pre-cast weight once (liger semantics, output dtype == input dtype);
    # constant block index keeps it VMEM-resident across grid steps.
    w2d = weight.reshape(1, hidden).astype(hidden_states.dtype)

    grid = (pl.cdiv(rows, tile_rows),)

    # Intermediate-aware scoped-VMEM limit: pipelined I/O + fp32 temporaries +
    # weight + small headroom, clamped below the physical capacity.
    cap = _vmem_capacity_bytes()
    tile_bytes = tile_rows * hidden * itemsize
    f32_tile_bytes = tile_rows * hidden * 4
    vmem_bytes = (2 * (2 * tile_bytes)           # double-buffered in + out
                  + 2 * f32_tile_bytes           # fp32 x / x_norm temporaries
                  + 2 * hidden * itemsize        # weight (double-buffered)
                  + (2 << 20))                   # headroom
    vmem_bytes = int(min(vmem_bytes, cap - (4 << 20)))
    vmem_bytes = max(vmem_bytes, 16 << 20)

    out = pl.pallas_call(
        functools.partial(_rmsnorm_kernel, eps=eps),
        out_shape=jax.ShapeDtypeStruct((rows, hidden), hidden_states.dtype),
        grid_spec=pltpu.PrefetchScalarGridSpec(
            num_scalar_prefetch=0,
            grid=grid,
            in_specs=[
                pl.BlockSpec((tile_rows, hidden), lambda i: (i, 0)),
                pl.BlockSpec((1, hidden), lambda i: (0, 0)),
            ],
            out_specs=pl.BlockSpec((tile_rows, hidden), lambda i: (i, 0)),
        ),
        compiler_params=pltpu.CompilerParams(
            dimension_semantics=("parallel",),
            vmem_limit_bytes=vmem_bytes,
        ),
    )(x2d, w2d)

    return out.reshape(orig_shape)


def _reference(x, weight, eps):
    xf = x.astype(jnp.float32)
    var = jnp.mean(xf * xf, axis=-1, keepdims=True)
    w = weight.astype(x.dtype)
    return (w * (xf * jax.lax.rsqrt(var + eps)).astype(x.dtype)).astype(x.dtype)


if __name__ == "__main__":
    # TODO(synk): DTensor / tensor-parallel dispatch in the original forward has
    # no single-device Pallas equivalent; only the RMSNorm math is implemented.
    eps = 1e-6

    # f32 case, lane-dense hidden, rows divide the tile exactly.
    batch, seq, hidden = 2, 8, 128
    key = jax.random.PRNGKey(0)
    x = jax.random.normal(key, (batch, seq, hidden), dtype=jnp.float32)
    weight = jnp.ones((hidden,), dtype=jnp.float32)  # nn.Parameter(torch.ones(H))

    out = jax.block_until_ready(llama_rms_norm(x, weight, eps=eps))
    ref = _reference(x, weight, eps)
    assert out.shape == x.shape and out.dtype == x.dtype
    assert jnp.allclose(out, ref, atol=1e-5, rtol=1e-5)

    # bf16 case with a forced small tile so the grid has a masked tail block
    # (rows=48, tile_rows=32 -> cdiv grid of 2, second block partially OOB).
    xb = jax.random.normal(jax.random.PRNGKey(1), (2, 24, hidden), dtype=jnp.bfloat16)
    wb = jnp.ones((hidden,), dtype=jnp.bfloat16)
    outb = jax.block_until_ready(llama_rms_norm(xb, wb, eps=eps, tile_rows=32))
    refb = _reference(xb, wb, eps)
    assert outb.shape == xb.shape and outb.dtype == xb.dtype
    assert jnp.allclose(outb.astype(jnp.float32), refb.astype(jnp.float32),
                        atol=2e-2, rtol=2e-2)

    # Auto-tiled bf16 case (exercises the capacity-aware tile chooser).
    xc = jax.random.normal(jax.random.PRNGKey(2), (4, 96, hidden), dtype=jnp.bfloat16)
    outc = jax.block_until_ready(llama_rms_norm(xc, wb, eps=eps))
    refc = _reference(xc, wb, eps)
    assert jnp.allclose(outc.astype(jnp.float32), refc.astype(jnp.float32),
                        atol=2e-2, rtol=2e-2)

    print("KERNEL_OK")
</pallas_src>

<mosaic_0001>
module attributes {stable_mosaic.version = 11 : i64} {
  func.func @_rmsnorm_kernel(%arg0: i32, %arg1: memref<16x128xf32, #tpu.memory_space<vmem>>, %arg2: memref<1x128xf32, #tpu.memory_space<vmem>>, %arg3: memref<16x128xf32, #tpu.memory_space<vmem>>) attributes {dimension_semantics = [#tpu.dimension_semantics<parallel>], iteration_bounds = array<i64: 1>, scalar_prefetch = 0 : i64, scratch_operands = 0 : i64, tpu.core_type = #tpu.core_type<tc>, window_params = [{transform_indices = @transform_0, window_bounds = array<i64: 16, 128>}, {pipeline_mode = #tpu.pipeline_mode<synchronous>, transform_indices = @transform_1, window_bounds = array<i64: 1, 128>}, {transform_indices = @transform_2, window_bounds = array<i64: 16, 128>}]} {
    %c0 = arith.constant 0 : index
    %c0_0 = arith.constant 0 : index
    %0 = vector.load %arg1[%c0, %c0_0] : memref<16x128xf32, #tpu.memory_space<vmem>>, vector<16x128xf32>
    %1 = arith.mulf %0, %0 : vector<16x128xf32>
    %cst = arith.constant dense<0.000000e+00> : vector<16xf32>
    %2 = vector.multi_reduction <add>, %1, %cst [1] : vector<16x128xf32> to vector<16xf32>
    %3 = vector.shape_cast %2 : vector<16xf32> to vector<16x1xf32>
    %cst_1 = arith.constant 1.280000e+02 : f32
    %4 = vector.broadcast %cst_1 : f32 to vector<16x1xf32>
    %5 = arith.divf %3, %4 : vector<16x1xf32>
    %cst_2 = arith.constant 9.99999997E-7 : f32
    %6 = vector.broadcast %cst_2 : f32 to vector<16x1xf32>
    %7 = arith.addf %5, %6 : vector<16x1xf32>
    %8 = math.rsqrt %7 : vector<16x1xf32>
    %c0_3 = arith.constant 0 : index
    %c0_4 = arith.constant 0 : index
    %9 = vector.load %arg1[%c0_3, %c0_4] : memref<16x128xf32, #tpu.memory_space<vmem>>, vector<16x128xf32>
    %10 = vector.broadcast %8 : vector<16x1xf32> to vector<16x128xf32>
    %11 = arith.mulf %9, %10 : vector<16x128xf32>
    %c0_5 = arith.constant 0 : index
    %c0_6 = arith.constant 0 : index
    %12 = vector.load %arg2[%c0_5, %c0_6] : memref<1x128xf32, #tpu.memory_space<vmem>>, vector<1x128xf32>
    %13 = vector.broadcast %12 : vector<1x128xf32> to vector<16x128xf32>
    %14 = arith.mulf %13, %11 : vector<16x128xf32>
    %c0_7 = arith.constant 0 : index
    %c0_8 = arith.constant 0 : index
    %15 = vector.load %arg3[%c0_7, %c0_8] : memref<16x128xf32, #tpu.memory_space<vmem>>, vector<16x128xf32>
    tpu.vector_store %arg3[%c0_7, %c0_8], %14 {strides = array<i32>} : memref<16x128xf32, #tpu.memory_space<vmem>>, vector<16x128xf32>,
    return
  }
  func.func @transform_0(%arg0: i32) -> (i32, i32) {
    %c0_i32 = arith.constant 0 : i32
    %c0_i32_0 = arith.constant 0 : i32
    return %arg0, %c0_i32 : i32, i32
  }
  func.func @transform_1(%arg0: i32) -> (i32, i32) {
    %c0_i32 = arith.constant 0 : i32
    %c0_i32_0 = arith.constant 0 : i32
    %c0_i32_1 = arith.constant 0 : i32
    return %c0_i32, %c0_i32_0 : i32, i32
  }
  func.func @transform_2(%arg0: i32) -> (i32, i32) {
    %c0_i32 = arith.constant 0 : i32
    %c0_i32_0 = arith.constant 0 : i32
    return %arg0, %c0_i32 : i32, i32
  }
}

</mosaic_0001>

<bundles_post_ra>
// kernel: tpu_custom_call.1
= control target key start
LH: loop header
LB: loop body
LE: loop exit
PB: predicated region body
PF: predicated region fallthrough
CT: control target
= control target key end

     0   :  { %7 = vsyncpa [#allocation3], 0  ;;  %s180_s0 = inlined_call_operand.hbm [shape: f32[16,128], index: 0, kind: input, shape index: {}]   ;;  %s181_s1 = inlined_call_operand.vmem [shape: f32[1,128], index: 1, kind: input, shape index: {}]   ;;  %s182_s2 = inlined_call_operand.hbm [shape: f32[16,128], index: 2, kind: output, shape index: {}]  }
   0x1   :  { %8 = vsyncpa [#allocation4], 0  ;;  %s128_s9 = smov [#allocation2]   ;;  %s80_s13 = scalar_lea.hbm %s180_s0, 256 }
   0x2   :  { %s14_s10 = sshll.u32 %s128_s9, 4  ;;  %p81_p0 = scmp.ne.s32.totalorder %s180_s0, %s80_s13  ;;  %s15_s10 = int_to_ptr.vmem [resolvable:$true] %s14_s10 }
   0x3   :  { %p84_p1 = scmp.lt.u32.totalorder %s80_s13, %s180_s0 }
   0x5   :  { %p86_p2 = pnand %p84_p1, %p81_p0 }
   0x7   :  { %89 = shalt.err (!%p86_p2)
}
   0x8   :  { %s90_s18 = scalar_lea.vmem %s15_s10, 256  ;;  %p95_p4 = scmp.lt.s32.totalorder %s15_s10, %s15_s10 }
   0x9   :  { %p91_p3 = scmp.ne.s32.totalorder %s15_s10, %s90_s18  ;;  %p96_p5 = scmp.lt.s32.totalorder %s90_s18, %s90_s18 }
   0xb   :  { %p97_p6 = por %p96_p5, %p95_p4 }
   0xd   :  { %p98_p7 = pnand %p97_p6, %p91_p3 }
   0xf   :  { %101 = shalt.err (!%p98_p7)
}
  0x10   :  { %s129_s19 = smov 128   ;;  %s130_s20 = smov 8  }
  0x11   :  { %20 = dma.hbm_to_vmem [thread:$0]  %s180_s0, 256, %s15_s10, [#allocation3], %s129_s19, %s129_s19, %s130_s20  }
  0x12   :  { %124 = dma.done.wait [#allocation3], 256  }
  0x13   :  { %125 = vsyncadd [#allocation3], 4294967040  ;;  %v26_v0 = vld [vmem:[#allocation2] sm:$0xff]  ;;  %v27_v1 = vld [vmem:[#allocation2 + $0x8] sm:$0xff]  ;;  %s131_s0 = smov [#allocation5]  }
  0x14   :  { %v28_v2 = vmul.f32 %v26_v0, %v26_v0  ;;  %v29_v3 = vmul.f32 %v27_v1, %v27_v1  ;;  %v71_v11 = vld [vmem:[%s181_s1] ss:$0 sm:$0xff]  ;;  %s59_s25 = sshll.u32 %s131_s0, 4  ;;  %s60_s25 = int_to_ptr.vmem [resolvable:$true] %s59_s25 }
  0x15   :  { %s102_s26 = scalar_lea.vmem %s60_s25, 256  ;;  %p107_p9 = scmp.lt.s32.totalorder %s60_s25, %s60_s25 }
  0x16   :  { %30 = vadd.xlane.f32.xlu0 %v28_v2  ;;  %p103_p8 = scmp.ne.s32.totalorder %s60_s25, %s102_s26  ;;  %p108_p10 = scmp.lt.s32.totalorder %s102_s26, %s102_s26 }
  0x18   :  { %p109_p11 = por %p108_p10, %p107_p9 }
  0x1a   :  { %32 = vadd.xlane.f32.xlu0 %v29_v3  ;;  %p110_p12 = pnand %p109_p11, %p103_p8 }
  0xa3   :  { %v31_v4 = vpop.xlane.xlu0 %30 }
  0xa4   :  { %v35_v5 = vmul.f32 0.0078125, %v31_v4 }
  0xa6   :  { %v37_v6 = vadd.f32 1e-06, %v35_v5 }
  0xa7   :  { %v33_v7 = vpop.xlane.xlu0 %32 }
  0xa8   :  { %76 = vrsqrt.f32 %v37_v6  ;;  %v36_v8 = vmul.f32 0.0078125, %v33_v7 }
  0xaa   :  { %v38_v9 = vadd.f32 1e-06, %v36_v8 }
  0xac   :  { %78 = vrsqrt.f32 %v38_v9 }
  0xb2   :  { %v77_v10 = vpop.eup %76 }
  0xb3   :  { %v41_v12 = vmul.f32 %v77_v10, %v26_v0 }
  0xb5   :  { %v50_v13 = vmul.f32 %v71_v11, %v41_v12 }
  0xb6   :  { %v79_v14 = vpop.eup %78 }
  0xb7   :  { %v42_v15 = vmul.f32 %v79_v14, %v27_v1  ;;  %52 = vst [vmem:[#allocation5] sm:$0xff] %v50_v13 }
  0xb9   :  { %v51_v16 = vmul.f32 %v71_v11, %v42_v15 }
  0xbb   :  { %53 = vst [vmem:[#allocation5 + $0x8] sm:$0xff] %v51_v16 }
  0xbc   :  { %113 = shalt.err (!%p110_p12)
}
  0xbd   :  { %s114_s1 = scalar_lea.hbm %s182_s2, 256 }
  0xbe   :  { %p115_p13 = scmp.ne.s32.totalorder %s182_s2, %s114_s1  ;;  %p118_p0 = scmp.lt.u32.totalorder %s114_s1, %s182_s2 }
  0xc0   :  { %p120_p1 = pnand %p118_p0, %p115_p13 }
  0xc2   :  { %123 = shalt.err (!%p120_p1)
}
  0xc3   :  { %65 = dma.vmem_to_hbm [thread:$0]  %s60_s25, 256, %s182_s2, [#allocation4], %s129_s19, %s129_s19, %s130_s20  }
  0xc4   :  { %126 = dma.done.wait [#allocation4], 256  }
  0xc5   :  { %127 = vsyncadd [#allocation4], 4294967040 }
  0xc6   :  { %69 = vsyncpa [#allocation3], 1 }
  0xc7   :  { %70 = vsyncpa [#allocation4], 1 }

</bundles_post_ra>
